<compile_context>
chip_gen: v6e
topology: v6e:2x2x1
jax: 0.10.0
libtpu: 0.0.40
codegen_flags: <defaults>
</compile_context>

<pallas_src>
import jax
import jax.numpy as jnp
from jax.experimental import pallas as pl
from jax.experimental.pallas import tpu as pltpu


# ---------------------------------------------------------------------------
# Kernels
# ---------------------------------------------------------------------------

def _softmax_weighted_sum(feats, v_ref, wv_ref, o_ref):
    # Keep everything in (TB, L, 1): the lane reduce over H naturally lands
    # there and the weighted sum over L consumes it directly -> no
    # lane<->sublane relayout between scoring, softmax and the value reduce.
    scores = jnp.sum(feats * wv_ref[...], axis=-1, keepdims=True)    # (TB, L, 1)
    m = jnp.max(scores, axis=1, keepdims=True)                       # (TB, 1, 1)
    e = jnp.exp(scores - m)                                          # (TB, L, 1)
    weights = e / jnp.sum(e, axis=1, keepdims=True)                  # (TB, L, 1)
    out = jnp.sum(weights * v_ref[...].astype(jnp.float32), axis=1)  # (TB, V)
    o_ref[...] = out.astype(o_ref.dtype)


def _fused_kernel(x_ref, v_ref, w_ref, wv_ref, o_ref):
    # x_ref: (TB*L, Q+K) = [queries | keys], w_ref: (Q+K, H) = [W_q ; W_k]
    # v_ref: (TB, L, V), wv_ref: (1, H), o_ref: (TB, V)
    tb, l, _ = v_ref.shape
    h = w_ref.shape[1]
    # One fused MXU matmul gives qh + kh directly (f32 accumulation).
    feats = jnp.tanh(
        jnp.dot(x_ref[...], w_ref[...], preferred_element_type=jnp.float32)
    ).reshape(tb, l, h)                                              # (TB, L, H)
    _softmax_weighted_sum(feats, v_ref, wv_ref, o_ref)


def _single_query_kernel(q_ref, k_ref, v_ref, wq_ref, wk_ref, wv_ref, o_ref):
    # q_ref: (TB, Q) - one query per batch row (num_queries == 1 case).
    tb, l, _ = v_ref.shape
    h = wq_ref.shape[1]
    qh = jnp.dot(q_ref[...], wq_ref[...], preferred_element_type=jnp.float32)   # (TB, H)
    kh = jnp.dot(k_ref[...], wk_ref[...], preferred_element_type=jnp.float32)   # (TB*L, H)
    feats = jnp.tanh(kh.reshape(tb, l, h) + qh[:, None, :])                     # (TB, L, H)
    _softmax_weighted_sum(feats, v_ref, wv_ref, o_ref)


# ---------------------------------------------------------------------------
# Tiling / budgeting helpers
# ---------------------------------------------------------------------------

def _round_up(x, m):
    return ((x + m - 1) // m) * m


def _padded2d_bytes(rows, cols, itemsize):
    # (8, 128) tiling of the last two dims of a VMEM block.
    return _round_up(max(rows, 1), 8) * _round_up(max(cols, 1), 128) * itemsize


def _vmem_capacity_bytes():
    try:
        cap = getattr(pltpu.get_tpu_info(), "vmem_capacity_bytes", None)
        if cap:
            return int(cap)
    except Exception:
        pass
    return 64 * 1024 * 1024          # conservative fallback (v7x per-TensorCore)


def _infer_num_tensorcores(vmem_cap):
    # v7x exposes 64 MiB VMEM per TensorCore and has 2 TCs per chip;
    # v5e/v6e have a single TC with 128 MiB.  Caller can override.
    return 2 if vmem_cap <= 64 * 1024 * 1024 else 1


def _step_vmem_bytes(tb, L, Q, K, V, H, mm_is, v_is, single_query):
    """Lane-pad-aware per-step VMEM footprint: inputs/outputs double-buffered
    by the BlockSpec pipeline plus the main f32 temporaries."""
    qk = Q + K
    b = 2 * _padded2d_bytes(1, H, 4)                                  # w_v row
    if single_query:
        b += 2 * (_padded2d_bytes(Q, H, mm_is) + _padded2d_bytes(K, H, mm_is))
        b += 2 * (_padded2d_bytes(tb, Q, mm_is)
                  + _padded2d_bytes(tb * L, K, mm_is))
    else:
        b += 2 * _padded2d_bytes(qk, H, mm_is)
        b += 2 * _padded2d_bytes(tb * L, qk, mm_is)
    b += 2 * tb * _padded2d_bytes(L, V, v_is)                         # values block
    b += 2 * _padded2d_bytes(tb, V, 4)                                # output block
    b += _padded2d_bytes(tb * L, H, 4)                                # tanh features temp
    b += 2 * tb * _padded2d_bytes(L, 128, 4)                          # softmax / wsum temps
    return b


def _pick_batch_tile(B, L, Q, K, V, H, mm_is, v_is, single_query, vmem_cap, num_tc):
    """Largest TB (multiple of 8) that (a) targets >= ~2K projection rows per
    grid step, (b) fits a per-generation VMEM budget after lane padding and
    double buffering, and (c) on 2-TC parts still leaves >= 2 (preferably even)
    grid steps."""
    B8 = _round_up(B, 8)
    budget = max(8 * 1024 * 1024, vmem_cap // 2)   # ~32 MiB on v7x, ~64 MiB on v5e/v6e
    tb = max(8, _round_up(pl.cdiv(2048, max(L, 1)), 8))
    tb = min(tb, B8)
    while tb > 8 and _step_vmem_bytes(tb, L, Q, K, V, H, mm_is, v_is,
                                      single_query) > budget:
        tb -= 8
    if num_tc > 1 and B8 >= 8 * num_tc:
        # v7x: give both TensorCores work; prefer an even step count.
        tb = min(tb, max(8, _round_up(pl.cdiv(B8, num_tc), 8)))
        steps = pl.cdiv(B8, tb)
        if steps > 1 and steps % 2:
            alt = max(8, _round_up(pl.cdiv(B8, steps + 1), 8))
            if pl.cdiv(B8, alt) % 2 == 0:
                tb = alt
    return tb


# ---------------------------------------------------------------------------
# Wrapper
# ---------------------------------------------------------------------------

def additive_attention(queries, keys, values, W_q, W_k, w_v, *,
                       batch_tile=None, matmul_dtype=jnp.float32,
                       num_tensorcores=None):
    """AdditiveAttention forward.

    queries (B, Lq, Q) with Lq == L or Lq == 1, keys (B, L, K),
    values (B, L, V); W_q (Q, H), W_k (K, H), w_v (H, 1).  Returns (B, V).
    matmul_dtype=jnp.bfloat16 halves the activation/weight/value DMA and uses
    the bf16 MXU path (supported on v5e, v6e and v7x); accumulation stays f32.
    """
    B, Lq, Q = queries.shape
    _, L, K = keys.shape
    _, _, V = values.shape
    H = W_q.shape[1]
    if Lq not in (1, L):
        raise ValueError(f"queries seq dim must be 1 or {L}, got {Lq}")
    single_query = (Lq == 1) and (L != 1)

    mm_dtype = jnp.dtype(matmul_dtype)
    v_dtype = mm_dtype if mm_dtype == jnp.bfloat16 else jnp.dtype(jnp.float32)
    mm_is, v_is = mm_dtype.itemsize, v_dtype.itemsize

    vmem_cap = _vmem_capacity_bytes()
    num_tc = (num_tensorcores if num_tensorcores is not None
              else _infer_num_tensorcores(vmem_cap))

    TB = (batch_tile if batch_tile is not None else
          _pick_batch_tile(B, L, Q, K, V, H, mm_is, v_is, single_query,
                           vmem_cap, num_tc))
    B_pad = _round_up(B, TB)
    steps = B_pad // TB

    if B_pad != B:
        # Zero-pad only the batch axis: padded rows softmax over zero scores
        # but multiply zero values, so their outputs are exact zeros and are
        # sliced off below (no -inf masking needed).
        pad = B_pad - B
        queries = jnp.pad(queries, ((0, pad), (0, 0), (0, 0)))
        keys = jnp.pad(keys, ((0, pad), (0, 0), (0, 0)))
        values = jnp.pad(values, ((0, pad), (0, 0), (0, 0)))

    values = values.astype(v_dtype)
    wv_row = w_v.reshape(1, H).astype(jnp.float32)   # lane-dense row for VPU scoring

    step_bytes = _step_vmem_bytes(TB, L, Q, K, V, H, mm_is, v_is, single_query)
    vmem_limit = int(min(max(vmem_cap - 8 * 1024 * 1024, 16 * 1024 * 1024),
                         max(32 * 1024 * 1024, step_bytes + 16 * 1024 * 1024)))
    cparams = pltpu.CompilerParams(dimension_semantics=("parallel",),
                                   vmem_limit_bytes=vmem_limit)

    out_shape = jax.ShapeDtypeStruct((B_pad, V), jnp.float32)
    out_spec = pl.BlockSpec((TB, V), lambda i: (i, 0))
    v_spec = pl.BlockSpec((TB, L, V), lambda i: (i, 0, 0))
    wv_spec = pl.BlockSpec((1, H), lambda i: (0, 0))

    if single_query:
        q2 = queries.reshape(B_pad, Q).astype(mm_dtype)
        k2 = keys.reshape(B_pad * L, K).astype(mm_dtype)
        wq = W_q.astype(mm_dtype)
        wk = W_k.astype(mm_dtype)
        cost = pl.CostEstimate(
            flops=int(2 * B_pad * (Q + L * K) * H + 4 * B_pad * L * H
                      + 2 * B_pad * L * V + 8 * B_pad * L),
            transcendentals=int(B_pad * L * (H + 1)),
            bytes_accessed=int(mm_is * (B_pad * (Q + L * K) + (Q + K) * H)
                               + v_is * B_pad * L * V + 4 * (H + B_pad * V)),
        )
        out = pl.pallas_call(
            _single_query_kernel,
            out_shape=out_shape,
            grid_spec=pltpu.PrefetchScalarGridSpec(
                num_scalar_prefetch=0,
                grid=(steps,),
                in_specs=[
                    pl.BlockSpec((TB, Q), lambda i: (i, 0)),
                    pl.BlockSpec((TB * L, K), lambda i: (i, 0)),
                    v_spec,
                    pl.BlockSpec((Q, H), lambda i: (0, 0)),
                    pl.BlockSpec((K, H), lambda i: (0, 0)),
                    wv_spec,
                ],
                out_specs=out_spec,
            ),
            compiler_params=cparams,
            cost_estimate=cost,
        )(q2, k2, values, wq, wk, wv_row)
    else:
        QK = Q + K
        # Fused activations / weights: one (TB*L, Q+K) @ (Q+K, H) matmul per step.
        x2 = jnp.concatenate(
            [queries.astype(mm_dtype), keys.astype(mm_dtype)], axis=-1
        ).reshape(B_pad * L, QK)
        w2 = jnp.concatenate([W_q.astype(mm_dtype), W_k.astype(mm_dtype)], axis=0)
        cost = pl.CostEstimate(
            flops=int(2 * B_pad * L * QK * H + 3 * B_pad * L * H
                      + 2 * B_pad * L * V + 8 * B_pad * L),
            transcendentals=int(B_pad * L * (H + 1)),
            bytes_accessed=int(mm_is * (B_pad * L * QK + QK * H)
                               + v_is * B_pad * L * V + 4 * (H + B_pad * V)),
        )
        out = pl.pallas_call(
            _fused_kernel,
            out_shape=out_shape,
            grid_spec=pltpu.PrefetchScalarGridSpec(
                num_scalar_prefetch=0,
                grid=(steps,),
                in_specs=[
                    pl.BlockSpec((TB * L, QK), lambda i: (i, 0)),
                    v_spec,
                    pl.BlockSpec((QK, H), lambda i: (0, 0)),
                    wv_spec,
                ],
                out_specs=out_spec,
            ),
            compiler_params=cparams,
            cost_estimate=cost,
        )(x2, values, w2, wv_row)

    return out[:B]


# ---------------------------------------------------------------------------
# Pure-JAX reference + self-test
# ---------------------------------------------------------------------------

def _reference(queries, keys, values, W_q, W_k, w_v):
    qh = queries @ W_q                      # (B, Lq, H)
    kh = keys @ W_k                         # (B, L, H)
    features = jnp.tanh(qh + kh)            # broadcasts when Lq == 1
    scores = (features @ w_v)[..., 0]       # (B, L)
    attn = jax.nn.softmax(scores, axis=-1)  # (B, L)
    return jnp.einsum("bl,blv->bv", attn, values)   # (B, V)


if __name__ == "__main__":
    B, L = 2, 8
    key_size, query_size, num_hiddens, value_dim = 16, 16, 32, 16

    key = jax.random.PRNGKey(0)
    kq, kk, kv, kwq, kwk, kwv = jax.random.split(key, 6)

    queries = jax.random.normal(kq, (B, L, query_size), jnp.float32)
    keys = jax.random.normal(kk, (B, L, key_size), jnp.float32)
    values = jax.random.normal(kv, (B, L, value_dim), jnp.float32)

    bound = 1.0 / num_hiddens ** 0.5
    W_q = jax.random.uniform(kwq, (query_size, num_hiddens), jnp.float32, -bound, bound)
    W_k = jax.random.uniform(kwk, (key_size, num_hiddens), jnp.float32, -bound, bound)
    w_v = jax.random.uniform(kwv, (num_hiddens, 1), jnp.float32, -bound, bound)

    # Fused-projection path (Lq == L), f32.
    out = jax.block_until_ready(
        additive_attention(queries, keys, values, W_q, W_k, w_v))
    ref = _reference(queries, keys, values, W_q, W_k, w_v)
    assert out.shape == (B, value_dim)
    assert jnp.allclose(out, ref, atol=1e-5, rtol=1e-5), "f32 fused path mismatch"

    # Single-query path (Lq == 1, no pre-broadcast), f32.
    q_single = queries[:, :1, :]
    out1 = jax.block_until_ready(
        additive_attention(q_single, keys, values, W_q, W_k, w_v))
    ref1 = _reference(q_single, keys, values, W_q, W_k, w_v)
    assert out1.shape == (B, value_dim)
    assert jnp.allclose(out1, ref1, atol=1e-5, rtol=1e-5), "single-query path mismatch"

    # bf16 MXU path (looser tolerance: tanh inputs are bf16-rounded products).
    out_bf16 = jax.block_until_ready(
        additive_attention(queries, keys, values, W_q, W_k, w_v,
                           matmul_dtype=jnp.bfloat16))
    assert jnp.allclose(out_bf16, ref, atol=5e-2, rtol=5e-2), "bf16 path mismatch"

    print("KERNEL_OK")
</pallas_src>

<mosaic_0001>
module attributes {stable_mosaic.version = 11 : i64} {
  func.func @_fused_kernel(%arg0: i32, %arg1: memref<64x32xf32, #tpu.memory_space<vmem>>, %arg2: memref<8x8x16xf32, #tpu.memory_space<vmem>>, %arg3: memref<32x32xf32, #tpu.memory_space<vmem>>, %arg4: memref<1x32xf32, #tpu.memory_space<vmem>>, %arg5: memref<8x16xf32, #tpu.memory_space<vmem>>) attributes {dimension_semantics = [#tpu.dimension_semantics<parallel>], iteration_bounds = array<i64: 1>, scalar_prefetch = 0 : i64, scratch_operands = 0 : i64, tpu.core_type = #tpu.core_type<tc>, window_params = [{transform_indices = @transform_0, window_bounds = array<i64: 64, 32>}, {transform_indices = @transform_1, window_bounds = array<i64: 8, 8, 16>}, {pipeline_mode = #tpu.pipeline_mode<synchronous>, transform_indices = @transform_2, window_bounds = array<i64: 32, 32>}, {pipeline_mode = #tpu.pipeline_mode<synchronous>, transform_indices = @transform_3, window_bounds = array<i64: 1, 32>}, {transform_indices = @transform_4, window_bounds = array<i64: 8, 16>}]} {
    %c0 = arith.constant 0 : index
    %c0_0 = arith.constant 0 : index
    %0 = vector.load %arg1[%c0, %c0_0] : memref<64x32xf32, #tpu.memory_space<vmem>>, vector<64x32xf32>
    %c0_1 = arith.constant 0 : index
    %c0_2 = arith.constant 0 : index
    %1 = vector.load %arg3[%c0_1, %c0_2] : memref<32x32xf32, #tpu.memory_space<vmem>>, vector<32x32xf32>
    %cst = arith.constant dense<0.000000e+00> : vector<64x32xf32>
    %2 = tpu.matmul %0, %1, %cst {dimension_numbers = #tpu.dot_dimension_numbers<[1], [0], [0], [1], [0, 0, 1, 1], [], []>} : vector<64x32xf32>, vector<32x32xf32>, vector<64x32xf32> -> vector<64x32xf32>
    %3 = math.tanh %2 : vector<64x32xf32>
    %4 = vector.shape_cast %3 : vector<64x32xf32> to vector<8x8x32xf32>
    %c0_3 = arith.constant 0 : index
    %c0_4 = arith.constant 0 : index
    %5 = vector.load %arg4[%c0_3, %c0_4] : memref<1x32xf32, #tpu.memory_space<vmem>>, vector<1x32xf32>
    %6 = vector.shape_cast %5 : vector<1x32xf32> to vector<1x1x32xf32>
    %7 = vector.broadcast %6 : vector<1x1x32xf32> to vector<8x8x32xf32>
    %8 = arith.mulf %4, %7 : vector<8x8x32xf32>
    %cst_5 = arith.constant dense<0.000000e+00> : vector<8x8xf32>
    %9 = vector.multi_reduction <add>, %8, %cst_5 [2] : vector<8x8x32xf32> to vector<8x8xf32>
    %10 = vector.shape_cast %9 : vector<8x8xf32> to vector<8x8x1xf32>
    %cst_6 = arith.constant dense<0xFF800000> : vector<8x1xf32>
    %11 = vector.multi_reduction <maximumf>, %10, %cst_6 [1] : vector<8x8x1xf32> to vector<8x1xf32>
    %12 = vector.shape_cast %11 : vector<8x1xf32> to vector<8x1x1xf32>
    %13 = vector.broadcast %12 : vector<8x1x1xf32> to vector<8x8x1xf32>
    %14 = arith.subf %10, %13 : vector<8x8x1xf32>
    %15 = math.exp %14 : vector<8x8x1xf32>
    %cst_7 = arith.constant dense<0.000000e+00> : vector<8x1xf32>
    %16 = vector.multi_reduction <add>, %15, %cst_7 [1] : vector<8x8x1xf32> to vector<8x1xf32>
    %17 = vector.shape_cast %16 : vector<8x1xf32> to vector<8x1x1xf32>
    %18 = vector.broadcast %17 : vector<8x1x1xf32> to vector<8x8x1xf32>
    %19 = arith.divf %15, %18 : vector<8x8x1xf32>
    %c0_8 = arith.constant 0 : index
    %c0_9 = arith.constant 0 : index
    %c0_10 = arith.constant 0 : index
    %20 = vector.load %arg2[%c0_8, %c0_9, %c0_10] : memref<8x8x16xf32, #tpu.memory_space<vmem>>, vector<8x8x16xf32>
    %21 = vector.broadcast %19 : vector<8x8x1xf32> to vector<8x8x16xf32>
    %22 = arith.mulf %21, %20 : vector<8x8x16xf32>
    %cst_11 = arith.constant dense<0.000000e+00> : vector<8x16xf32>
    %23 = vector.multi_reduction <add>, %22, %cst_11 [1] : vector<8x8x16xf32> to vector<8x16xf32>
    %c0_12 = arith.constant 0 : index
    %c0_13 = arith.constant 0 : index
    %24 = vector.load %arg5[%c0_12, %c0_13] : memref<8x16xf32, #tpu.memory_space<vmem>>, vector<8x16xf32>
    tpu.vector_store %arg5[%c0_12, %c0_13], %23 {strides = array<i32>} : memref<8x16xf32, #tpu.memory_space<vmem>>, vector<8x16xf32>,
    return
  }
  func.func @transform_0(%arg0: i32) -> (i32, i32) {
    %c0_i32 = arith.constant 0 : i32
    %c0_i32_0 = arith.constant 0 : i32
    return %arg0, %c0_i32 : i32, i32
  }
  func.func @transform_1(%arg0: i32) -> (i32, i32, i32) {
    %c0_i32 = arith.constant 0 : i32
    %c0_i32_0 = arith.constant 0 : i32
    %c0_i32_1 = arith.constant 0 : i32
    return %arg0, %c0_i32, %c0_i32_0 : i32, i32, i32
  }
  func.func @transform_2(%arg0: i32) -> (i32, i32) {
    %c0_i32 = arith.constant 0 : i32
    %c0_i32_0 = arith.constant 0 : i32
    %c0_i32_1 = arith.constant 0 : i32
    return %c0_i32, %c0_i32_0 : i32, i32
  }
  func.func @transform_3(%arg0: i32) -> (i32, i32) {
    %c0_i32 = arith.constant 0 : i32
    %c0_i32_0 = arith.constant 0 : i32
    %c0_i32_1 = arith.constant 0 : i32
    return %c0_i32, %c0_i32_0 : i32, i32
  }
  func.func @transform_4(%arg0: i32) -> (i32, i32) {
    %c0_i32 = arith.constant 0 : i32
    %c0_i32_0 = arith.constant 0 : i32
    return %arg0, %c0_i32 : i32, i32
  }
}

</mosaic_0001>

<bundles_post_ra>
// kernel: tpu_custom_call.1
= control target key start
LH: loop header
LB: loop body
LE: loop exit
PB: predicated region body
PF: predicated region fallthrough
CT: control target
= control target key end

     0   :  { %vm30_vm0 = vcmask 261120   ;;  %s731_s0 = inlined_call_operand.vmem [shape: f32[64,32], index: 0, kind: input, shape index: {}]   ;;  %s732_s1 = inlined_call_operand.vmem [shape: f32[8,8,16], index: 1, kind: input, shape index: {}]   ;;  %s733_s2 = inlined_call_operand.vmem [shape: f32[32,32], index: 2, kind: input, shape index: {}]   ;;  %s734_s3 = inlined_call_operand.vmem [shape: f32[1,32], index: 3, kind: input, shape index: {}]   ;;  %s735_s4 = inlined_call_operand.hbm [shape: f32[8,16], index: 4, kind: output, shape index: {}]  }
   0x1   :  { %v29_v0 = vld [vmem:[%s733_s2 + $0x18] sm:$0xff]  ;;  %v28_v1 = vld [vmem:[%s733_s2 + $0x10] sm:$0xff]  ;;  %v18_v2 = vld [vmem:[%s731_s0] sm:$0xff] }
   0x2   :  { %475 = vmatprep.subr.mxu0 %v29_v0  ;;  %495 = vmatprep.subr.mxu1 %v29_v0  ;;  %v27_v3 = vld [vmem:[%s733_s2 + $0x8] sm:$0xff]  ;;  %v26_v4 = vld [vmem:[%s733_s2] sm:$0xff] }
   0x3   :  { %476 = vmatpush3.msra.mxu0 %v29_v0  ;;  %499 = vmatpush3.msra.mxu1 %v29_v0 }
   0x4   :  { %477 = vmatprep.subr.mxu0 %v28_v1  ;;  %483 = vmatprep.mubr.msk.f32.mxu0 %vm30_vm0, %v18_v2 }
   0x5   :  { %478 = vmatpush3.msra.mxu0 %v28_v1  ;;  %496 = vmatprep.subr.mxu1 %v28_v1 }
   0x6   :  { %9 = vsyncpa [#allocation3], 0  ;;  %479 = vmatprep.subr.mxu0 %v27_v3  ;;  %500 = vmatpush3.msra.mxu1 %v28_v1  ;;  %v19_v5 = vld [vmem:[%s731_s0 + $0x8] sm:$0xff]  ;;  %v20_v6 = vld [vmem:[%s731_s0 + $0x10] sm:$0xff]  ;;  %vm359_vm1 = vcmask 130048   ;;  %vm424_vm2 = vcmask 1041409  }
   0x7   :  { %480 = vmatpush3.msra.mxu0 %v27_v3  ;;  %497 = vmatprep.subr.mxu1 %v27_v3  ;;  %v22_v7 = vld [vmem:[%s731_s0 + $0x20] sm:$0xff]  ;;  %v23_v8 = vld [vmem:[%s731_s0 + $0x28] sm:$0xff]  ;;  %v24_v9 = vld [vmem:[%s731_s0 + $0x30] sm:$0xff]  ;;  %vm426_vm3 = vcmask 1042434   ;;  %vm428_vm4 = vcmask 1043459   ;;  %vm430_vm5 = vcmask 1044484  }
   0x8   :  { %481 = vmatprep.subr.mxu0 %v26_v4  ;;  %501 = vmatpush3.msra.mxu1 %v27_v3  ;;  %v21_v10 = vld [vmem:[%s731_s0 + $0x18] sm:$0xff]  ;;  %v462_v20 = vld [vmem:[%s734_s3] ss:$0 sm:$0xff]  ;;  %vm432_vm6 = vcmask 1045509   ;;  %vm434_vm7 = vcmask 1046534   ;;  %vm436_vm8 = vcmask 1047559  }
   0x9   :  { %482 = vmatpush3.msra.mxu0 %v26_v4  ;;  %498 = vmatprep.subr.mxu1 %v26_v4  ;;  %v25_v11 = vld [vmem:[%s731_s0 + $0x38] sm:$0xff] }
   0xa   :  { %484 = vmatmul.mubr.msk.f32.vlgmr.msra.gmra.mxu0 %vm30_vm0, %v19_v5  ;;  %502 = vmatpush3.msra.mxu1 %v26_v4 }
   0xb   :  { %486 = vmatprep.mubr.msk.f32.mxu0 %vm30_vm0, %v20_v6  ;;  %489 = vmatprep.mubr.msk.f32.mxu1 %vm30_vm0, %v22_v7 }
   0xc   :  { %490 = vmatmul.mubr.msk.f32.vlgmr.msra.gmra.mxu1 %vm30_vm0, %v23_v8 }
   0xd   :  { %492 = vmatprep.mubr.msk.f32.mxu1 %vm30_vm0, %v24_v9 }
   0xe   :  { %487 = vmatmul.mubr.msk.f32.gmra.mxu0 %vm30_vm0, %v21_v10 }
  0x10   :  { %493 = vmatmul.mubr.msk.f32.gmra.mxu1 %vm30_vm0, %v25_v11 }
  0xca   :  { %v485_v12 = vpop.f32.mrf.mxu0 }
  0xcb   :  { %504 = vtanh.f32 %v485_v12 }
  0xcc   :  { %v121_v13 = vpop.f32.mrf.mxu0  ;;  %v491_v14 = vpop.f32.mrf.mxu1 }
  0xcd   :  { %506 = vtanh.f32 %v121_v13 }
  0xce   :  { %v488_v15 = vpop.f32.mrf.mxu0  ;;  %v141_v16 = vpop.f32.mrf.mxu1 }
  0xcf   :  { %508 = vtanh.f32 %v488_v15 }
  0xd0   :  { %v131_v17 = vpop.f32.mrf.mxu0  ;;  %510 = vtanh.f32 %v141_v16  ;;  %v494_v18 = vpop.f32.mrf.mxu1 }
  0xd1   :  { %512 = vtanh.f32 %v131_v17 }
  0xd2   :  { %514 = vtanh.f32 %v491_v14  ;;  %v151_v19 = vpop.f32.mrf.mxu1 }
  0xd3   :  { %516 = vtanh.f32 %v151_v19 }
  0xd4   :  { %518 = vtanh.f32 %v494_v18 }
  0xd8   :  { %v505_v21 = vpop.eup %504 }
  0xd9   :  { %v176_v22 = vmul.f32 %v505_v21, %v462_v20 }
  0xda   :  { %v507_v23 = vpop.eup %506 }
  0xdb   :  { %v186_v24 = vsel %vm30_vm0, %v176_v22, 0.0  ;;  %v175_v25 = vmul.f32 %v507_v23, %v462_v20 }
  0xdc   :  { %v509_v26 = vpop.eup %508  ;;  %187 = vadd.xlane.f32.xlu0 %v186_v24 }
  0xdd   :  { %v511_v27 = vpop.eup %510  ;;  %v178_v28 = vmul.f32 %v509_v26, %v462_v20  ;;  %v183_v32 = vsel %vm30_vm0, %v175_v25, 0.0 }
  0xde   :  { %v513_v29 = vpop.eup %512  ;;  %v179_v30 = vmul.f32 %v511_v27, %v462_v20 }
  0xdf   :  { %v515_v31 = vpop.eup %514  ;;  %v192_v33 = vsel %vm30_vm0, %v178_v28, 0.0  ;;  %v177_v34 = vmul.f32 %v513_v29, %v462_v20 }
  0xe0   :  { %v517_v35 = vpop.eup %516  ;;  %184 = vadd.xlane.f32.xlu0 %v183_v32  ;;  %193 = vadd.xlane.f32.xlu1 %v192_v33  ;;  %v195_v36 = vsel %vm30_vm0, %v179_v30, 0.0  ;;  %v180_v39 = vmul.f32 %v515_v31, %v462_v20 }
  0xe1   :  { %v181_v37 = vmul.f32 %v517_v35, %v462_v20  ;;  %v189_v38 = vsel %vm30_vm0, %v177_v34, 0.0  ;;  %v519_v40 = vpop.eup %518 }
  0xe2   :  { %v198_v42 = vsel %vm30_vm0, %v180_v39, 0.0  ;;  %v182_v43 = vmul.f32 %v519_v40, %v462_v20 }
  0xe3   :  { %v201_v41 = vsel %vm30_vm0, %v181_v37, 0.0 }
  0xe4   :  { %196 = vadd.xlane.f32.xlu0 %v195_v36  ;;  %190 = vadd.xlane.f32.xlu1 %v189_v38  ;;  %v204_v44 = vsel %vm30_vm0, %v182_v43, 0.0 }
  0xe8   :  { %202 = vadd.xlane.f32.xlu0 %v201_v41  ;;  %199 = vadd.xlane.f32.xlu1 %v198_v42 }
  0xec   :  { %205 = vadd.xlane.f32.xlu1 %v204_v44 }
 0x165   :  { %v188_v45 = vpop.xlane.xlu0 %187 }
 0x166   :  { %v213_v46 = vrot.slane %v188_v45, 4 }
 0x168   :  { %v214_v47 = vmax.f32 %v188_v45, %v213_v46 }
 0x169   :  { %v185_v48 = vpop.xlane.xlu0 %184  ;;  %v194_v49 = vpop.xlane.xlu1 %193 }
 0x16a   :  { %v215_v50 = vrot.slane %v214_v47, 2  ;;  %v207_v51 = vrot.slane %v185_v48, 4  ;;  %v225_v52 = vrot.slane %v194_v49, 4 }
 0x16c   :  { %v216_v53 = vmax.f32 %v214_v47, %v215_v50  ;;  %v208_v54 = vmax.f32 %v185_v48, %v207_v51  ;;  %v226_v55 = vmax.f32 %v194_v49, %v225_v52 }
 0x16d   :  { %v197_v56 = vpop.xlane.xlu0 %196  ;;  %v191_v57 = vpop.xlane.xlu1 %190 }
 0x16e   :  { %v217_v58 = vrot.slane %v216_v53, 1  ;;  %v209_v59 = vrot.slane %v208_v54, 2  ;;  %v227_v60 = vrot.slane %v226_v55, 2  ;;  %v231_v61 = vrot.slane %v197_v56, 4 }
 0x16f   :  { %v219_v62 = vrot.slane %v191_v57, 4 }
 0x170   :  { %v218_v63 = vmax.f32 %v216_v53, %v217_v58  ;;  %v210_v0 = vmax.f32 %v208_v54, %v209_v59  ;;  %v228_v1 = vmax.f32 %v226_v55, %v227_v60  ;;  %v232_v2 = vmax.f32 %v197_v56, %v231_v61 }
 0x171   :  { %v220_v3 = vmax.f32 %v191_v57, %v219_v62  ;;  %v203_v4 = vpop.xlane.xlu0 %202  ;;  %v200_v5 = vpop.xlane.xlu1 %199 }
 0x172   :  { %v256_v6 = vsub.f32 %v188_v45, %v218_v63  ;;  %v211_v7 = vrot.slane %v210_v0, 1  ;;  %v229_v8 = vrot.slane %v228_v1, 1  ;;  %v233_v9 = vrot.slane %v232_v2, 2 }
 0x173   :  { %v221_v10 = vrot.slane %v220_v3, 2  ;;  %v243_v11 = vrot.slane %v203_v4, 4  ;;  %v237_v12 = vrot.slane %v200_v5, 4 }
 0x174   :  { %v265_v13 = vmul.f32 1.442695, %v256_v6  ;;  %v212_v14 = vmax.f32 %v210_v0, %v211_v7  ;;  %v230_v15 = vmax.f32 %v228_v1, %v229_v8  ;;  %v234_v16 = vmax.f32 %v232_v2, %v233_v9 }
 0x175   :  { %v222_v17 = vmax.f32 %v220_v3, %v221_v10  ;;  %v244_v18 = vmax.f32 %v203_v4, %v243_v11  ;;  %v238_v19 = vmax.f32 %v200_v5, %v237_v12  ;;  %v206_v20 = vpop.xlane.xlu1 %205 }
 0x176   :  { %520 = vpow2.f32 %v265_v13  ;;  %v255_v21 = vsub.f32 %v185_v48, %v212_v14  ;;  %v258_v22 = vsub.f32 %v194_v49, %v230_v15  ;;  %v235_v23 = vrot.slane %v234_v16, 1 }
 0x177   :  { %v223_v24 = vrot.slane %v222_v17, 1  ;;  %v245_v25 = vrot.slane %v244_v18, 2  ;;  %v239_v26 = vrot.slane %v238_v19, 2  ;;  %v249_v27 = vrot.slane %v206_v20, 4 }
 0x178   :  { %v263_v28 = vmul.f32 1.442695, %v255_v21  ;;  %v269_v29 = vmul.f32 1.442695, %v258_v22  ;;  %v236_v30 = vmax.f32 %v234_v16, %v235_v23 }
 0x179   :  { %v224_v31 = vmax.f32 %v222_v17, %v223_v24  ;;  %v246_v32 = vmax.f32 %v244_v18, %v245_v25  ;;  %v240_v33 = vmax.f32 %v238_v19, %v239_v26  ;;  %v250_v34 = vmax.f32 %v206_v20, %v249_v27 }
 0x17a   :  { %522 = vpow2.f32 %v263_v28  ;;  %v259_v35 = vsub.f32 %v197_v56, %v236_v30 }
 0x17b   :  { %524 = vpow2.f32 %v269_v29  ;;  %v257_v36 = vsub.f32 %v191_v57, %v224_v31  ;;  %v247_v37 = vrot.slane %v246_v32, 1  ;;  %v241_v38 = vrot.slane %v240_v33, 1 }
 0x17c   :  { %v271_v39 = vmul.f32 1.442695, %v259_v35  ;;  %v251_v40 = vrot.slane %v250_v34, 2 }
 0x17d   :  { %v267_v41 = vmul.f32 1.442695, %v257_v36  ;;  %v248_v42 = vmax.f32 %v246_v32, %v247_v37  ;;  %v242_v43 = vmax.f32 %v240_v33, %v241_v38 }
 0x17e   :  { %526 = vpow2.f32 %v271_v39  ;;  %v252_v44 = vmax.f32 %v250_v34, %v251_v40 }
 0x17f   :  { %528 = vpow2.f32 %v267_v41  ;;  %v261_v45 = vsub.f32 %v203_v4, %v248_v42  ;;  %v260_v46 = vsub.f32 %v200_v5, %v242_v43 }
 0x180   :  { %v253_v47 = vrot.slane %v252_v44, 1 }
 0x181   :  { %v275_v48 = vmul.f32 1.442695, %v261_v45  ;;  %v273_v49 = vmul.f32 1.442695, %v260_v46 }
 0x182   :  { %v254_v50 = vmax.f32 %v252_v44, %v253_v47  ;;  %v344_v44 = vld [vmem:[%s732_s1 + $0x8] sm:$0xff] }
 0x183   :  { %v655_v51 = vpop.eup %520  ;;  %530 = vpow2.f32 %v275_v48 }
 0x184   :  { %v285_v52 = vrot.slane %v655_v51, 4  ;;  %532 = vpow2.f32 %v273_v49  ;;  %v262_v53 = vsub.f32 %v206_v20, %v254_v50  ;;  %v343_v50 = vld [vmem:[%s732_s1] sm:$0xff] }
 0x186   :  { %v286_v54 = vadd.f32 %v655_v51, %v285_v52  ;;  %v277_v55 = vmul.f32 1.442695, %v262_v53 }
 0x187   :  { %v659_v56 = vpop.eup %522 }
 0x188   :  { %v661_v57 = vpop.eup %524  ;;  %v287_v58 = vrot.slane %v286_v54, 2  ;;  %v279_v59 = vrot.slane %v659_v56, 4  ;;  %534 = vpow2.f32 %v277_v55 }
 0x189   :  { %v297_v60 = vrot.slane %v661_v57, 4 }
 0x18a   :  { %v288_v61 = vadd.f32 %v287_v58, %v286_v54  ;;  %v280_v62 = vadd.f32 %v659_v56, %v279_v59  ;;  %v346_v54 = vld [vmem:[%s732_s1 + $0x18] sm:$0xff] }
 0x18b   :  { %v666_v63 = vpop.eup %526  ;;  %v298_v0 = vadd.f32 %v661_v57, %v297_v60 }
 0x18c   :  { %v669_v1 = vpop.eup %528  ;;  %v289_v2 = vrot.slane %v288_v61, 1  ;;  %v281_v3 = vrot.slane %v280_v62, 2  ;;  %v303_v4 = vrot.slane %v666_v63, 4 }
 0x18d   :  { %v299_v5 = vrot.slane %v298_v0, 2  ;;  %v291_v6 = vrot.slane %v669_v1, 4 }
 0x18e   :  { %v290_v7 = vadd.f32 %v289_v2, %v288_v61  ;;  %v282_v8 = vadd.f32 %v281_v3, %v280_v62  ;;  %v304_v9 = vadd.f32 %v666_v63, %v303_v4  ;;  %v347_v61 = vld [vmem:[%s732_s1 + $0x20] sm:$0xff]  ;;  %v345_v3 = vld [vmem:[%s732_s1 + $0x10] sm:$0xff] }
 0x18f   :  { %v300_v10 = vadd.f32 %v299_v5, %v298_v0  ;;  %v292_v11 = vadd.f32 %v669_v1, %v291_v6 }
 0x190   :  { %v675_v12 = vpop.eup %530  ;;  %536 = vrcp.f32 %v290_v7  ;;  %v283_v13 = vrot.slane %v282_v8, 1  ;;  %v305_v14 = vrot.slane %v304_v9, 2 }
 0x191   :  { %v677_v15 = vpop.eup %532  ;;  %v301_v16 = vrot.slane %v300_v10, 1  ;;  %v293_v17 = vrot.slane %v292_v11, 2  ;;  %v315_v18 = vrot.slane %v675_v12, 4 }
 0x192   :  { %v284_v19 = vadd.f32 %v283_v13, %v282_v8  ;;  %v306_v20 = vadd.f32 %v305_v14, %v304_v9  ;;  %v309_v21 = vrot.slane %v677_v15, 4 }
 0x193   :  { %v294_v22 = vadd.f32 %v293_v17, %v292_v11  ;;  %v316_v23 = vadd.f32 %v675_v12, %v315_v18  ;;  %v302_v24 = vadd.f32 %v301_v16, %v300_v10 }
 0x194   :  { %538 = vrcp.f32 %v284_v19  ;;  %v310_v25 = vadd.f32 %v677_v15, %v309_v21  ;;  %v307_v26 = vrot.slane %v306_v20, 1 }
 0x195   :  { %v683_v27 = vpop.eup %534  ;;  %v295_v28 = vrot.slane %v294_v22, 1  ;;  %v317_v29 = vrot.slane %v316_v23, 2  ;;  %540 = vrcp.f32 %v302_v24 }
 0x196   :  { %v311_v30 = vrot.slane %v310_v25, 2  ;;  %v321_v31 = vrot.slane %v683_v27, 4  ;;  %v308_v32 = vadd.f32 %v307_v26, %v306_v20 }
 0x197   :  { %v296_v33 = vadd.f32 %v295_v28, %v294_v22  ;;  %v318_v34 = vadd.f32 %v317_v29, %v316_v23 }
 0x198   :  { %v322_v35 = vadd.f32 %v683_v27, %v321_v31  ;;  %v312_v36 = vadd.f32 %v311_v30, %v310_v25  ;;  %542 = vrcp.f32 %v308_v32 }
 0x199   :  { %544 = vrcp.f32 %v296_v33  ;;  %v319_v37 = vrot.slane %v318_v34, 1  ;;  %v350_v33 = vld [vmem:[%s732_s1 + $0x38] sm:$0xff] }
 0x19a   :  { %v313_v38 = vrot.slane %v312_v36, 1  ;;  %v323_v39 = vrot.slane %v322_v35, 2 }
 0x19b   :  { %v320_v40 = vadd.f32 %v319_v37, %v318_v34 }
 0x19c   :  { %v314_v41 = vadd.f32 %v313_v38, %v312_v36  ;;  %v324_v42 = vadd.f32 %v323_v39, %v322_v35 }
 0x19d   :  { %v537_v43 = vpop.eup %536  ;;  %546 = vrcp.f32 %v320_v40 }
 0x19e   :  { %v325_v45 = vrot.slane %v324_v42, 1  ;;  %v330_v46 = vmul.f32 %v537_v43, %v655_v51  ;;  %548 = vrcp.f32 %v314_v41 }
 0x1a0   :  { %v326_v47 = vadd.f32 %v325_v45, %v324_v42  ;;  %v352_v48 = vmul.f32 %v344_v44, %v330_v46 }
 0x1a1   :  { %v539_v49 = vpop.eup %538 }
 0x1a2   :  { %v541_v52 = vpop.eup %540  ;;  %v328_v53 = vmul.f32 %v539_v49, %v659_v56  ;;  %550 = vrcp.f32 %v326_v47  ;;  %v367_v55 = vsel %vm359_vm1, %v352_v48, 0.0 }
 0x1a3   :  { %v334_v51 = vmul.f32 %v541_v52, %v661_v57  ;;  %v368_v58 = vrot.slane %v367_v55, 4 }
 0x1a4   :  { %v351_v59 = vmul.f32 %v343_v50, %v328_v53 }
 0x1a5   :  { %v543_v60 = vpop.eup %542  ;;  %v354_v62 = vmul.f32 %v346_v54, %v334_v51  ;;  %v369_v0 = vadd.f32 %v368_v58, %v367_v55 }
 0x1a6   :  { %v545_v2 = vpop.eup %544  ;;  %v336_v56 = vmul.f32 %v543_v60, %v666_v63  ;;  %v360_v4 = vsel %vm359_vm1, %v351_v59, 0.0  ;;  %v349_v63 = vld [vmem:[%s732_s1 + $0x30] sm:$0xff] }
 0x1a7   :  { %v332_v57 = vmul.f32 %v545_v2, %v669_v1  ;;  %v361_v5 = vrot.slane %v360_v4, 4  ;;  %v381_v6 = vsel %vm359_vm1, %v354_v62, 0.0  ;;  %v370_v11 = vrot.slane %v369_v0, 2  ;;  %v348_v1 = vld [vmem:[%s732_s1 + $0x28] sm:$0xff]  ;;  %s574_s1 = smov [#allocation2]  }
 0x1a8   :  { %v355_v7 = vmul.f32 %v347_v61, %v336_v56  ;;  %v382_v8 = vrot.slane %v381_v6, 4  ;;  %s446_s28 = sshll.u32 %s574_s1, 4  ;;  %s447_s28 = int_to_ptr.vmem [resolvable:$true] %s446_s28 }
 0x1a9   :  { %v353_v9 = vmul.f32 %v345_v3, %v332_v57  ;;  %v362_v10 = vadd.f32 %v361_v5, %v360_v4  ;;  %v371_v28 = vadd.f32 %v370_v11, %v369_v0  ;;  %s552_s29 = scalar_lea.vmem %s447_s28, 128  ;;  %p557_p1 = scmp.lt.s32.totalorder %s447_s28, %s447_s28 }
 0x1aa   :  { %v547_v13 = vpop.eup %546  ;;  %v383_v14 = vadd.f32 %v382_v8, %v381_v6  ;;  %v388_v16 = vsel %vm359_vm1, %v355_v7, 0.0  ;;  %p553_p0 = scmp.ne.s32.totalorder %s447_s28, %s552_s29  ;;  %p558_p2 = scmp.lt.s32.totalorder %s552_s29, %s552_s29 }
 0x1ab   :  { %v549_v17 = vpop.eup %548  ;;  %v340_v18 = vmul.f32 %v547_v13, %v675_v12  ;;  %v363_v19 = vrot.slane %v362_v10, 2  ;;  %v374_v20 = vsel %vm359_vm1, %v353_v9, 0.0  ;;  %v389_v24 = vrot.slane %v388_v16, 4 }
 0x1ac   :  { %v338_v21 = vmul.f32 %v549_v17, %v677_v15  ;;  %v375_v22 = vrot.slane %v374_v20, 4  ;;  %v384_v23 = vrot.slane %v383_v14, 2  ;;  %v372_v38 = vrot.slane %v371_v28, 1  ;;  %p559_p3 = por %p558_p2, %p557_p1 }
 0x1ad   :  { %v357_v25 = vmul.f32 %v349_v63, %v340_v18  ;;  %v364_v26 = vadd.f32 %v363_v19, %v362_v10  ;;  %v390_v32 = vadd.f32 %v389_v24, %v388_v16 }
 0x1ae   :  { %v356_v29 = vmul.f32 %v348_v1, %v338_v21  ;;  %v376_v30 = vadd.f32 %v375_v22, %v374_v20  ;;  %v385_v31 = vadd.f32 %v384_v23, %v383_v14  ;;  %v373_v50 = vadd.f32 %v372_v38, %v371_v28  ;;  %p560_p4 = pnand %p559_p3, %p553_p0 }
 0x1af   :  { %v551_v12 = vpop.eup %550  ;;  %v365_v34 = vrot.slane %v364_v26, 1  ;;  %v402_v35 = vsel %vm359_vm1, %v357_v25, 0.0  ;;  %v391_v37 = vrot.slane %v390_v32, 2 }
 0x1b0   :  { %v342_v15 = vmul.f32 %v551_v12, %v683_v27  ;;  %v377_v36 = vrot.slane %v376_v30, 2  ;;  %v395_v39 = vsel %vm359_vm1, %v356_v29, 0.0  ;;  %v403_v40 = vrot.slane %v402_v35, 4 }
 0x1b1   :  { %v386_v43 = vrot.slane %v385_v31, 1  ;;  %v392_v44 = vadd.f32 %v391_v37, %v390_v32  ;;  %v366_v45 = vadd.f32 %v365_v34, %v364_v26  ;;  %v396_v46 = vrot.slane %v395_v39, 4 }
 0x1b2   :  { %v358_v41 = vmul.f32 %v350_v33, %v342_v15  ;;  %v378_v42 = vadd.f32 %v377_v36, %v376_v30  ;;  %v404_v47 = vadd.f32 %v403_v40, %v402_v35 }
 0x1b3   :  { %v397_v27 = vadd.f32 %v396_v46, %v395_v39  ;;  %v387_v55 = vadd.f32 %v386_v43, %v385_v31  ;;  %v393_v51 = vrot.slane %v392_v44, 1  ;;  %v425_v61 = vsel %vm424_vm2, %v373_v50, %v366_v45 }
 0x1b4   :  { %v379_v48 = vrot.slane %v378_v42, 1  ;;  %v409_v49 = vsel %vm359_vm1, %v358_v41, 0.0  ;;  %v405_v52 = vrot.slane %v404_v47, 2 }
 0x1b5   :  { %v410_v53 = vrot.slane %v409_v49, 4  ;;  %v398_v58 = vrot.slane %v397_v27, 2  ;;  %v394_v4 = vadd.f32 %v393_v51, %v392_v44 }
 0x1b6   :  { %v380_v54 = vadd.f32 %v379_v48, %v378_v42  ;;  %v406_v59 = vadd.f32 %v405_v52, %v404_v47 }
 0x1b7   :  { %v411_v60 = vadd.f32 %v410_v53, %v409_v49  ;;  %v399_v0 = vadd.f32 %v398_v58, %v397_v27 }
 0x1b8   :  { %v427_v62 = vsel %vm426_vm3, %v380_v54, %v425_v61  ;;  %v407_v2 = vrot.slane %v406_v59, 1 }
 0x1b9   :  { %v412_v56 = vrot.slane %v411_v60, 2  ;;  %v429_v3 = vsel %vm428_vm4, %v387_v55, %v427_v62  ;;  %v400_v57 = vrot.slane %v399_v0, 1 }
 0x1ba   :  { %v408_v6 = vadd.f32 %v407_v2, %v406_v59  ;;  %v431_v7 = vsel %vm430_vm5, %v394_v4, %v429_v3 }
 0x1bb   :  { %v413_v5 = vadd.f32 %v412_v56, %v411_v60  ;;  %v401_v8 = vadd.f32 %v400_v57, %v399_v0 }
 0x1bd   :  { %v414_v9 = vrot.slane %v413_v5, 1  ;;  %v433_v11 = vsel %vm432_vm6, %v401_v8, %v431_v7 }
 0x1be   :  { %v435_v13 = vsel %vm434_vm7, %v408_v6, %v433_v11 }
 0x1bf   :  { %v415_v10 = vadd.f32 %v414_v9, %v413_v5 }
 0x1c1   :  { %v437_v63 = vsel %vm436_vm8, %v415_v10, %v435_v13 }
 0x1c2   :  { %439 = vst.msk [vmem:[#allocation2] sm:$0xff] %vm359_vm1, %v437_v63 }
 0x1c3   :  { %563 = shalt.err (!%p560_p4)
}
 0x1c4   :  { %449 = dma.vmem_to_hbm [thread:$0]  %s447_s28, 128, %s735_s4, [#allocation3]  }
 0x1c5   :  { %572 = dma.done.wait [#allocation3], 128  }
 0x1c6   :  { %573 = vsyncadd [#allocation3], 4294967168 }
 0x1c7   :  { %453 = vsyncpa [#allocation3], 1 }

</bundles_post_ra>
